<compile_context>
chip_gen: v7x
topology: tpu7x:2x2x1
jax: 0.10.0
libtpu: 0.0.40
codegen_flags: <defaults>
</compile_context>

<pallas_src>
import functools

import jax
import jax.numpy as jnp
from jax.experimental import pallas as pl
from jax.experimental.pallas import tpu as pltpu

# Module parameters are fixed in __init__ -> compile-time constants.
_W_SUB = 100.0   # Submodule.weight
_W_OUT = 42.0    # self.weight

_LANES = 128
_TILE_ROWS = 1024                       # 1024x128 f32 = 512 KiB per buffer
_TILE_ELEMS = _TILE_ROWS * _LANES
_SMALL_MAX_ELEMS = 1 << 20              # 4 MiB in + 4 MiB out: safe on v5e/v6e/v7x
_VMEM_LIMIT = 32 * 1024 * 1024          # explicit scoped-VMEM limit (all gens)


def _small_kernel(x_ref, o_ref):
    """Whole-array resident path: reductions + nested cond in one pass."""
    x = x_ref[...]                                   # (1, n) in VMEM
    s = jnp.sum(x, keepdims=True)                    # x.sum()
    a = jnp.sum(jnp.abs(x), keepdims=True)           # abs(x).sum()
    outer = s > 0.0
    inner = a > 100.0
    y = jnp.where(outer,
                  jnp.where(inner, x * _W_SUB, x / _W_SUB),
                  x - _W_OUT)
    o_ref[...] = y.astype(o_ref.dtype)


def _reduce_kernel(x_ref, s_ref, a_ref):
    """Pass 1 (tiled): accumulate sum(x) and sum(|x|); one load per tile."""
    @pl.when(pl.program_id(0) == 0)
    def _():
        s_ref[...] = jnp.zeros_like(s_ref)
        a_ref[...] = jnp.zeros_like(a_ref)

    x = x_ref[...]                                   # single load of the tile
    s_ref[...] += jnp.sum(x, keepdims=True)
    a_ref[...] += jnp.sum(jnp.abs(x), keepdims=True)


def _apply_kernel(s_ref, a_ref, x_ref, o_ref):
    """Pass 2 (tiled): apply the globally decided branch to one tile."""
    outer = s_ref[0] > 0.0                           # scalars from SMEM
    inner = a_ref[0] > 100.0
    x = x_ref[...]
    y = jnp.where(outer,
                  jnp.where(inner, x * _W_SUB, x / _W_SUB),
                  x - _W_OUT)
    o_ref[...] = y.astype(o_ref.dtype)


@functools.partial(jax.jit, static_argnames=("force_tiled",))
def control_flow_cond_nested(x, force_tiled=False):
    """JAX/Pallas equivalent of ControlFlowCondNestedModule.forward."""
    orig_shape = x.shape
    xf = x.astype(jnp.float32)          # torch promotes int -> float here
    n = xf.size

    if n <= _SMALL_MAX_ELEMS and not force_tiled:
        # Metadata-only (1, n) view: no pad / slice-back around the kernel.
        y = pl.pallas_call(
            _small_kernel,
            out_shape=jax.ShapeDtypeStruct((1, n), jnp.float32),
            in_specs=[pl.BlockSpec(memory_space=pltpu.MemorySpace.VMEM)],
            out_specs=pl.BlockSpec(memory_space=pltpu.MemorySpace.VMEM),
            compiler_params=pltpu.CompilerParams(vmem_limit_bytes=_VMEM_LIMIT),
        )(xf.reshape(1, n))
        return y.reshape(orig_shape)

    # ---- Two-pass tiled fallback for large inputs --------------------------
    num_tiles = -(-n // _TILE_ELEMS)
    padded = num_tiles * _TILE_ELEMS
    x_flat = xf.reshape(-1)
    if padded != n:
        # Zero padding is neutral for both sum() and abs().sum(); the padded
        # tail of the output is sliced off below (only in the ragged case).
        x_flat = jnp.pad(x_flat, (0, padded - n))
    rows = padded // _LANES               # multiple of _TILE_ROWS (and of 8)
    x2d = x_flat.reshape(rows, _LANES)    # lane-dense slab

    s, a = pl.pallas_call(
        _reduce_kernel,
        out_shape=(jax.ShapeDtypeStruct((1, 1), jnp.float32),
                   jax.ShapeDtypeStruct((1, 1), jnp.float32)),
        grid=(num_tiles,),
        in_specs=[pl.BlockSpec((_TILE_ROWS, _LANES), lambda i: (i, 0))],
        out_specs=(pl.BlockSpec((1, 1), lambda i: (0, 0)),
                   pl.BlockSpec((1, 1), lambda i: (0, 0))),
        compiler_params=pltpu.CompilerParams(
            dimension_semantics=("arbitrary",),
            vmem_limit_bytes=_VMEM_LIMIT),
    )(x2d)

    y2d = pl.pallas_call(
        _apply_kernel,
        out_shape=jax.ShapeDtypeStruct((rows, _LANES), jnp.float32),
        grid=(num_tiles,),
        in_specs=[
            pl.BlockSpec(memory_space=pltpu.MemorySpace.SMEM),   # sum(x)
            pl.BlockSpec(memory_space=pltpu.MemorySpace.SMEM),   # sum(|x|)
            pl.BlockSpec((_TILE_ROWS, _LANES), lambda i: (i, 0)),
        ],
        out_specs=pl.BlockSpec((_TILE_ROWS, _LANES), lambda i: (i, 0)),
        compiler_params=pltpu.CompilerParams(
            dimension_semantics=("parallel",),
            vmem_limit_bytes=_VMEM_LIMIT),
    )(s.reshape(1), a.reshape(1), x2d)

    y_flat = y2d.reshape(-1)
    if padded != n:
        y_flat = y_flat[:n]
    return y_flat.reshape(orig_shape)


if __name__ == "__main__":
    key = jax.random.PRNGKey(0)
    k1, k2, k3 = jax.random.split(key, 3)

    def ref_fn(x):
        xf = x.astype(jnp.float32)
        s = jnp.sum(xf)
        a = jnp.sum(jnp.abs(xf))
        y_sub = jnp.where(a > 100.0, xf * _W_SUB, xf / _W_SUB)
        return jnp.where(s > 0.0, y_sub, xf - _W_OUT)

    cases = [
        # (name, x, force_tiled)
        ("module example: sum>0, |x|sum<=100 -> x/100",
         jnp.array([-1, 2], dtype=jnp.int32), False),
        ("sum>0, |x|sum>100 -> x*100",
         jax.random.uniform(k1, (8,), jnp.float32, 15.0, 25.0), False),
        ("sum<=0 -> x-42",
         jax.random.uniform(k2, (8,), jnp.float32, -5.0, -1.0), False),
        ("tiled two-pass fallback (ragged tail)",
         jax.random.uniform(k3, (300,), jnp.float32, 10.0, 20.0), True),
    ]

    for name, x, tiled in cases:
        out = jax.block_until_ready(control_flow_cond_nested(x, force_tiled=tiled))
        ref = ref_fn(x)
        assert out.shape == x.shape, (name, out.shape, x.shape)
        assert jnp.allclose(out, ref, rtol=1e-6, atol=1e-6), (name, out, ref)

    print("KERNEL_OK")
</pallas_src>

<mosaic_0001>
module attributes {stable_mosaic.version = 11 : i64} {
  func.func @_small_kernel(%arg0: memref<1x2xf32, #tpu.memory_space<vmem>>, %arg1: memref<1x2xf32, #tpu.memory_space<vmem>>) attributes {dimension_semantics = [], scalar_prefetch = 0 : i64, scratch_operands = 0 : i64, tpu.core_type = #tpu.core_type<tc>} {
    %c0 = arith.constant 0 : index
    %c0_0 = arith.constant 0 : index
    %0 = vector.load %arg0[%c0, %c0_0] : memref<1x2xf32, #tpu.memory_space<vmem>>, vector<1x2xf32>
    %1 = vector.shape_cast %0 : vector<1x2xf32> to vector<1x1x2xf32>
    %cst = arith.constant dense<0.000000e+00> : vector<1xf32>
    %2 = vector.multi_reduction <add>, %1, %cst [1, 2] : vector<1x1x2xf32> to vector<1xf32>
    %3 = vector.shape_cast %2 : vector<1xf32> to vector<1x1x1xf32>
    %4 = vector.extract %3[0, 0, 0] : f32 from vector<1x1x1xf32>
    %5 = vector.broadcast %4 : f32 to vector<1x1xf32>
    %6 = math.absf %0 : vector<1x2xf32>
    %7 = vector.shape_cast %6 : vector<1x2xf32> to vector<1x1x2xf32>
    %cst_1 = arith.constant dense<0.000000e+00> : vector<1xf32>
    %8 = vector.multi_reduction <add>, %7, %cst_1 [1, 2] : vector<1x1x2xf32> to vector<1xf32>
    %9 = vector.shape_cast %8 : vector<1xf32> to vector<1x1x1xf32>
    %10 = vector.extract %9[0, 0, 0] : f32 from vector<1x1x1xf32>
    %11 = vector.broadcast %10 : f32 to vector<1x1xf32>
    %cst_2 = arith.constant 0.000000e+00 : f32
    %12 = vector.broadcast %cst_2 : f32 to vector<1x1xf32>
    %13 = arith.cmpf ogt, %5, %12 : vector<1x1xf32>
    %cst_3 = arith.constant 1.000000e+02 : f32
    %14 = vector.broadcast %cst_3 : f32 to vector<1x1xf32>
    %15 = arith.cmpf ogt, %11, %14 : vector<1x1xf32>
    %cst_4 = arith.constant 1.000000e+02 : f32
    %16 = vector.broadcast %cst_4 : f32 to vector<1x2xf32>
    %17 = arith.mulf %0, %16 : vector<1x2xf32>
    %cst_5 = arith.constant 1.000000e+02 : f32
    %18 = vector.broadcast %cst_5 : f32 to vector<1x2xf32>
    %19 = arith.divf %0, %18 : vector<1x2xf32>
    %20 = vector.shape_cast %15 : vector<1x1xi1> to vector<1x1xi1>
    %21 = vector.broadcast %20 : vector<1x1xi1> to vector<1x2xi1>
    %22 = arith.select %21, %17, %19 : vector<1x2xi1>, vector<1x2xf32>
    %cst_6 = arith.constant 4.200000e+01 : f32
    %23 = vector.broadcast %cst_6 : f32 to vector<1x2xf32>
    %24 = arith.subf %0, %23 : vector<1x2xf32>
    %25 = vector.shape_cast %13 : vector<1x1xi1> to vector<1x1xi1>
    %26 = vector.broadcast %25 : vector<1x1xi1> to vector<1x2xi1>
    %27 = arith.select %26, %22, %24 : vector<1x2xi1>, vector<1x2xf32>
    %c0_7 = arith.constant 0 : index
    %c0_8 = arith.constant 0 : index
    %28 = vector.load %arg1[%c0_7, %c0_8] : memref<1x2xf32, #tpu.memory_space<vmem>>, vector<1x2xf32>
    tpu.vector_store %arg1[%c0_7, %c0_8], %27 {strides = array<i32>} : memref<1x2xf32, #tpu.memory_space<vmem>>, vector<1x2xf32>,
    return
  }
}

</mosaic_0001>

<bundles_post_ra>
// kernel: control_flow_cond_nested.1
= control target key start
LH: loop header
LB: loop body
LE: loop exit
PB: predicated region body
PF: predicated region fallthrough
CT: control target
= control target key end

     0   :  { %vm10_vm0 = vcmask 8192   ;;  %s120_s0 = inlined_call_operand.vmem [shape: f32[1,2], index: 0, kind: input, shape index: {}]   ;;  %s121_s1 = inlined_call_operand.hbm [shape: f32[1,2], index: 1, kind: output, shape index: {}]  }
   0x1   :  { %v9_v0 = vld [vmem:[%s120_s0] sm:$0x1] }
   0x2   :  { %6 = vsyncpa [#allocation3], 0  ;;  %v11_v1 = vsel %vm10_vm0, %v9_v0, 0.0  ;;  %v22_v2 = vand.u32 2147483647, %v9_v0  ;;  %v36_v18 = vmul.f32 100.0, %v9_v0 }
   0x3   :  { %12 = vadd.xlane.f32.xlu0 %v11_v1  ;;  %v38_v19 = vmul.f32 0.01, %v9_v0  ;;  %v61_v21 = vadd.f32 -42.0, %v9_v0  ;;  %s91_s9 = smov [#allocation2]  }
   0x4   :  { %v23_v3 = vsel %vm10_vm0, %v22_v2, 0.0  ;;  %s53_s10 = sshll.u32 %s91_s9, 4  ;;  %s54_s10 = int_to_ptr.vmem [resolvable:$true] %s53_s10 }
   0x5   :  { %s67_s11 = scalar_lea.vmem %s54_s10, 16  ;;  %s71_s12 = scalar_lea.vmem %s54_s10, 32 }
   0x6   :  { %p68_p0 = scmp.ne.s32.totalorder %s54_s10, %s67_s11  ;;  %p72_p1 = scmp.lt.s32.totalorder %s54_s10, %s54_s10 }
   0x7   :  { %24 = vadd.xlane.f32.xlu0 %v23_v3  ;;  %p73_p2 = scmp.lt.s32.totalorder %s71_s12, %s67_s11 }
   0x9   :  { %p74_p3 = por %p73_p2, %p72_p1 }
   0xb   :  { %p75_p4 = pnand %p74_p3, %p68_p0 }
  0x90   :  { %v13_v4 = vpop.xlane.xlu0 %12 }
  0x91   :  { %v14_v5 = vrot.slane %v13_v4, 4 }
  0x93   :  { %v15_v6 = vadd.f32 %v14_v5, %v13_v4 }
  0x94   :  { %v25_v7 = vpop.xlane.xlu0 %24 }
  0x95   :  { %v16_v8 = vrot.slane %v15_v6, 2  ;;  %v26_v9 = vrot.slane %v25_v7, 4 }
  0x97   :  { %v27_v10 = vadd.f32 %v26_v9, %v25_v7  ;;  %v17_v11 = vadd.f32 %v16_v8, %v15_v6 }
  0x99   :  { %v28_v12 = vrot.slane %v27_v10, 2  ;;  %v18_v13 = vrot.slane %v17_v11, 1 }
  0x9b   :  { %v29_v14 = vadd.f32 %v28_v12, %v27_v10  ;;  %v19_v15 = vadd.f32 %v18_v13, %v17_v11 }
  0x9d   :  { %62 = vpush %v19_v15  ;;  %v30_v16 = vrot.slane %v29_v14, 1 }
  0x9f   :  { %v31_v17 = vadd.f32 %v30_v16, %v29_v14 }
  0xa1   :  { %64 = vpush %v31_v17 }
  0xce   :  { %s63_s0 = spop %62 }
  0xcf   :  { %v21_v20 = vstv %s63_s0 }
  0xd0   :  { %vm34_vm2 = vcmp.gt.f32.partialorder %v21_v20, 0.0 }
  0xd2   :  { %s65_s8 = spop %64 }
  0xd3   :  { %v33_v22 = vstv %s65_s8 }
  0xd4   :  { %vm35_vm1 = vcmp.gt.f32.partialorder %v33_v22, 100.0 }
  0xd5   :  { %v41_v23 = vsel %vm35_vm1, %v36_v18, %v38_v19 }
  0xd6   :  { %v45_v24 = vsel %vm34_vm2, %v41_v23, %v61_v21 }
  0xd7   :  { %46 = vst.msk [vmem:[#allocation2] sm:$0x1] %vm10_vm0, %v45_v24 }
  0xd8   :  { %78 = shalt.err (!%p75_p4)
}
  0xd9   :  { %s79_s15 = scalar_lea.hbm %s121_s1, 16 }
  0xda   :  { %p80_p5 = scmp.ne.s32.totalorder %s121_s1, %s79_s15  ;;  %p83_p6 = scmp.lt.u32.totalorder %s79_s15, %s121_s1 }
  0xdc   :  { %p85_p7 = pnand %p83_p6, %p80_p5 }
  0xde   :  { %88 = shalt.err (!%p85_p7)
}
  0xdf   :  { %56 = dma.vmem_to_hbm [thread:$0]  %s54_s10, 16, %s121_s1, [#allocation3]  }
  0xe0   :  { %89 = dma.done.wait [#allocation3], 16  }
  0xe1   :  { %90 = vsyncadd [#allocation3], 4294967280 }
  0xe2   :  { %60 = vsyncpa [#allocation3], 1 }

</bundles_post_ra>
